<compile_context>
chip_gen: v5e
topology: v5e:2x2
jax: 0.10.0
libtpu: 0.0.40
codegen_flags: <defaults>
</compile_context>

<pallas_src>
import jax
import jax.numpy as jnp
from jax.experimental import pallas as pl
from jax.experimental.pallas import tpu as pltpu

BN_EPS = 1e-5


def autoencoder_kernel(x_ref,
                       w1_ref, b1_ref, w2_ref, b2_ref, w3_ref, b3_ref,
                       w4_ref, b4_ref, w5_ref, b5_ref, w6_ref, b6_ref,
                       o_ref):
    x = x_ref[...]                                   # bf16 (bt, pad_in)

    # ---------------- encode ----------------
    h = jnp.dot(x, w1_ref[...], preferred_element_type=jnp.float32) + b1_ref[...]
    h = jnp.maximum(h, 0.0).astype(jnp.bfloat16)     # ReLU; Dropout == identity (eval)
    h = jnp.dot(h, w2_ref[...], preferred_element_type=jnp.float32) + b2_ref[...]
    h = jnp.maximum(h, 0.0).astype(jnp.bfloat16)
    z = jnp.dot(h, w3_ref[...], preferred_element_type=jnp.float32) + b3_ref[...]
    # (BatchNorm1d eval-mode already folded into w3/b3 on the host.)

    # ---------------- decode ----------------
    z = z.astype(jnp.bfloat16)
    h = jnp.dot(z, w4_ref[...], preferred_element_type=jnp.float32) + b4_ref[...]
    h = jnp.maximum(h, 0.0).astype(jnp.bfloat16)
    h = jnp.dot(h, w5_ref[...], preferred_element_type=jnp.float32) + b5_ref[...]
    h = jnp.maximum(h, 0.0).astype(jnp.bfloat16)
    o_ref[...] = (jnp.dot(h, w6_ref[...], preferred_element_type=jnp.float32)
                  + b6_ref[...]).astype(o_ref.dtype)


def autoencoder_forward(x, params, *, batch_tile=None):
    """x: (B, in_shape) f32.  params: dict of weights/biases/BN stats (f32)."""
    B, in_shape = x.shape
    f32 = jnp.float32
    bf16 = jnp.bfloat16

    # ---- host-side prep (f32): fold eval-mode BatchNorm1d into the w3/b3 linear ----
    scale = params["bn_gamma"] * jax.lax.rsqrt(params["bn_var"] + BN_EPS)    # (1, enc)
    w3 = params["w3"] * scale                                                # column-wise
    b3 = params["b3"] * scale + params["bn_beta"] - params["bn_mean"] * scale

    # ---- lane-dense padding: pad the I/O feature dim up to a multiple of 128 ----
    pad_in = ((in_shape + 127) // 128) * 128
    w1 = jnp.pad(params["w1"], ((0, pad_in - in_shape), (0, 0)))   # extra rows hit zero inputs
    w6 = jnp.pad(params["w6"], ((0, 0), (0, pad_in - in_shape)))   # extra output cols sliced off
    b6 = jnp.pad(params["b6"], ((0, 0), (0, pad_in - in_shape)))

    # Weights in bf16 (MXU-native, half the DMA bytes); biases stay f32.
    ordered = [
        w1.astype(bf16), params["b1"].astype(f32),
        params["w2"].astype(bf16), params["b2"].astype(f32),
        w3.astype(bf16), b3.astype(f32),
        params["w4"].astype(bf16), params["b4"].astype(f32),
        params["w5"].astype(bf16), params["b5"].astype(f32),
        w6.astype(bf16), b6.astype(f32),
    ]

    # ---- batch tiling: large tiles, but keep >=2 grid steps when the batch allows
    # (v7x has 2 TensorCores; "parallel" shards the grid across them). ----
    if batch_tile is None:
        batch_tile = 256
        while batch_tile > 8 and B <= batch_tile:
            batch_tile //= 2
    batch_tile = max(8, int(batch_tile))

    B_pad = pl.cdiv(B, batch_tile) * batch_tile
    x_p = jnp.pad(x, ((0, B_pad - B), (0, pad_in - in_shape))).astype(bf16)

    x_spec = pl.BlockSpec((batch_tile, pad_in), lambda i: (i, 0))
    # Grid-invariant parameters: full block, constant index_map, single buffer
    # (no per-step re-DMA, no wasted second VMEM buffer).
    param_specs = [
        pl.BlockSpec(p.shape, lambda i: (0, 0), pipeline_mode=pl.Buffered(1))
        for p in ordered
    ]
    out_spec = pl.BlockSpec((batch_tile, pad_in), lambda i: (i, 0))

    out = pl.pallas_call(
        autoencoder_kernel,
        out_shape=jax.ShapeDtypeStruct((B_pad, pad_in), f32),
        grid_spec=pltpu.PrefetchScalarGridSpec(
            num_scalar_prefetch=0,
            grid=(B_pad // batch_tile,),
            in_specs=[x_spec] + param_specs,
            out_specs=out_spec,
        ),
        compiler_params=pltpu.CompilerParams(
            dimension_semantics=("parallel",),
            # Above the 16/32 MiB scoped defaults (v5e/v6e) so large batch tiles
            # double-buffer cleanly; comfortably under v7x's 64 MiB physical VMEM.
            vmem_limit_bytes=48 * 1024 * 1024,
        ),
    )(x_p, *ordered)

    return out[:B, :in_shape]


def init_params(key, in_shape, enc_shape):
    """Deterministic synthetic parameters (shapes follow the nn.Module)."""
    ks = jax.random.split(key, 16)

    def lin(kw, kb, fan_in, fan_out):
        # uniform(-1/sqrt(fan_in), 1/sqrt(fan_in)), same scale as torch Linear init
        bound = 1.0 / jnp.sqrt(jnp.float32(fan_in))
        w = jax.random.uniform(kw, (fan_in, fan_out), jnp.float32, -bound, bound)
        b = jax.random.uniform(kb, (1, fan_out), jnp.float32, -bound, bound)
        return w, b

    w1, b1 = lin(ks[0], ks[1], in_shape, 128)
    w2, b2 = lin(ks[2], ks[3], 128, 64)
    w3, b3 = lin(ks[4], ks[5], 64, enc_shape)
    w4, b4 = lin(ks[6], ks[7], enc_shape, 64)
    w5, b5 = lin(ks[8], ks[9], 64, 128)
    w6, b6 = lin(ks[10], ks[11], 128, in_shape)

    # Non-trivial BatchNorm running stats so the host-side fold is exercised.
    bn_gamma = 1.0 + 0.1 * jax.random.normal(ks[12], (1, enc_shape), jnp.float32)
    bn_beta = 0.1 * jax.random.normal(ks[13], (1, enc_shape), jnp.float32)
    bn_mean = 0.1 * jax.random.normal(ks[14], (1, enc_shape), jnp.float32)
    bn_var = jax.random.uniform(ks[15], (1, enc_shape), jnp.float32, 0.5, 1.5)

    return dict(
        w1=w1, b1=b1, w2=w2, b2=b2, w3=w3, b3=b3,
        bn_gamma=bn_gamma, bn_beta=bn_beta, bn_mean=bn_mean, bn_var=bn_var,
        w4=w4, b4=b4, w5=w5, b5=b5, w6=w6, b6=b6,
    )


def reference_forward(x, p):
    """Pure-JAX f32 reference matching the PyTorch module in eval mode."""
    h = jnp.maximum(x @ p["w1"] + p["b1"], 0.0)
    h = jnp.maximum(h @ p["w2"] + p["b2"], 0.0)
    z = h @ p["w3"] + p["b3"]
    z = (z - p["bn_mean"]) / jnp.sqrt(p["bn_var"] + BN_EPS) * p["bn_gamma"] + p["bn_beta"]
    h = jnp.maximum(z @ p["w4"] + p["b4"], 0.0)
    h = jnp.maximum(h @ p["w5"] + p["b5"], 0.0)
    return h @ p["w6"] + p["b6"]


if __name__ == "__main__":
    B, IN_SHAPE, ENC_SHAPE = 256, 32, 16   # grid of 2 tiles (128 rows each)

    key = jax.random.PRNGKey(0)
    k_x, k_p = jax.random.split(key)
    x = jax.random.normal(k_x, (B, IN_SHAPE), jnp.float32)
    params = init_params(k_p, IN_SHAPE, ENC_SHAPE)

    out = autoencoder_forward(x, params)
    out = jax.block_until_ready(out)

    ref = reference_forward(x, params)
    assert out.shape == (B, IN_SHAPE)
    # bf16 weights/activations vs. pure-f32 reference -> loosened tolerance.
    assert jnp.allclose(out, ref, atol=5e-2, rtol=5e-2), "mismatch vs JAX reference"

    print("KERNEL_OK")
</pallas_src>

<mosaic_0001>
module attributes {stable_mosaic.version = 11 : i64} {
  func.func @autoencoder_kernel(%arg0: i32, %arg1: memref<128x128xbf16, #tpu.memory_space<vmem>>, %arg2: memref<128x128xbf16, #tpu.memory_space<vmem>>, %arg3: memref<1x128xf32, #tpu.memory_space<vmem>>, %arg4: memref<128x64xbf16, #tpu.memory_space<vmem>>, %arg5: memref<1x64xf32, #tpu.memory_space<vmem>>, %arg6: memref<64x16xbf16, #tpu.memory_space<vmem>>, %arg7: memref<1x16xf32, #tpu.memory_space<vmem>>, %arg8: memref<16x64xbf16, #tpu.memory_space<vmem>>, %arg9: memref<1x64xf32, #tpu.memory_space<vmem>>, %arg10: memref<64x128xbf16, #tpu.memory_space<vmem>>, %arg11: memref<1x128xf32, #tpu.memory_space<vmem>>, %arg12: memref<128x128xbf16, #tpu.memory_space<vmem>>, %arg13: memref<1x128xf32, #tpu.memory_space<vmem>>, %arg14: memref<128x128xf32, #tpu.memory_space<vmem>>) attributes {dimension_semantics = [#tpu.dimension_semantics<parallel>], iteration_bounds = array<i64: 2>, scalar_prefetch = 0 : i64, scratch_operands = 0 : i64, tpu.core_type = #tpu.core_type<tc>, window_params = [{transform_indices = @transform_0, window_bounds = array<i64: 128, 128>}, {pipeline_mode = #tpu.pipeline_mode<synchronous>, transform_indices = @transform_1, window_bounds = array<i64: 128, 128>}, {pipeline_mode = #tpu.pipeline_mode<synchronous>, transform_indices = @transform_2, window_bounds = array<i64: 1, 128>}, {pipeline_mode = #tpu.pipeline_mode<synchronous>, transform_indices = @transform_3, window_bounds = array<i64: 128, 64>}, {pipeline_mode = #tpu.pipeline_mode<synchronous>, transform_indices = @transform_4, window_bounds = array<i64: 1, 64>}, {pipeline_mode = #tpu.pipeline_mode<synchronous>, transform_indices = @transform_5, window_bounds = array<i64: 64, 16>}, {pipeline_mode = #tpu.pipeline_mode<synchronous>, transform_indices = @transform_6, window_bounds = array<i64: 1, 16>}, {pipeline_mode = #tpu.pipeline_mode<synchronous>, transform_indices = @transform_7, window_bounds = array<i64: 16, 64>}, {pipeline_mode = #tpu.pipeline_mode<synchronous>, transform_indices = @transform_8, window_bounds = array<i64: 1, 64>}, {pipeline_mode = #tpu.pipeline_mode<synchronous>, transform_indices = @transform_9, window_bounds = array<i64: 64, 128>}, {pipeline_mode = #tpu.pipeline_mode<synchronous>, transform_indices = @transform_10, window_bounds = array<i64: 1, 128>}, {pipeline_mode = #tpu.pipeline_mode<synchronous>, transform_indices = @transform_11, window_bounds = array<i64: 128, 128>}, {pipeline_mode = #tpu.pipeline_mode<synchronous>, transform_indices = @transform_12, window_bounds = array<i64: 1, 128>}, {transform_indices = @transform_13, window_bounds = array<i64: 128, 128>}]} {
    %c0 = arith.constant 0 : index
    %c0_0 = arith.constant 0 : index
    %0 = vector.load %arg1[%c0, %c0_0] : memref<128x128xbf16, #tpu.memory_space<vmem>>, vector<128x128xbf16>
    %c0_1 = arith.constant 0 : index
    %c0_2 = arith.constant 0 : index
    %1 = vector.load %arg2[%c0_1, %c0_2] : memref<128x128xbf16, #tpu.memory_space<vmem>>, vector<128x128xbf16>
    %cst = arith.constant dense<0.000000e+00> : vector<128x128xf32>
    %2 = tpu.matmul %0, %1, %cst {dimension_numbers = #tpu.dot_dimension_numbers<[1], [0], [0], [1], [0, 0, 1, 1], [], []>} : vector<128x128xbf16>, vector<128x128xbf16>, vector<128x128xf32> -> vector<128x128xf32>
    %c0_3 = arith.constant 0 : index
    %c0_4 = arith.constant 0 : index
    %3 = vector.load %arg3[%c0_3, %c0_4] : memref<1x128xf32, #tpu.memory_space<vmem>>, vector<1x128xf32>
    %4 = vector.broadcast %3 : vector<1x128xf32> to vector<128x128xf32>
    %5 = arith.addf %2, %4 : vector<128x128xf32>
    %cst_5 = arith.constant 0.000000e+00 : f32
    %6 = vector.broadcast %cst_5 : f32 to vector<128x128xf32>
    %7 = arith.maximumf %5, %6 : vector<128x128xf32>
    %8 = arith.truncf %7 : vector<128x128xf32> to vector<128x128xbf16>
    %c0_6 = arith.constant 0 : index
    %c0_7 = arith.constant 0 : index
    %9 = vector.load %arg4[%c0_6, %c0_7] : memref<128x64xbf16, #tpu.memory_space<vmem>>, vector<128x64xbf16>
    %cst_8 = arith.constant dense<0.000000e+00> : vector<128x64xf32>
    %10 = tpu.matmul %8, %9, %cst_8 {dimension_numbers = #tpu.dot_dimension_numbers<[1], [0], [0], [1], [0, 0, 1, 1], [], []>} : vector<128x128xbf16>, vector<128x64xbf16>, vector<128x64xf32> -> vector<128x64xf32>
    %c0_9 = arith.constant 0 : index
    %c0_10 = arith.constant 0 : index
    %11 = vector.load %arg5[%c0_9, %c0_10] : memref<1x64xf32, #tpu.memory_space<vmem>>, vector<1x64xf32>
    %12 = vector.broadcast %11 : vector<1x64xf32> to vector<128x64xf32>
    %13 = arith.addf %10, %12 : vector<128x64xf32>
    %cst_11 = arith.constant 0.000000e+00 : f32
    %14 = vector.broadcast %cst_11 : f32 to vector<128x64xf32>
    %15 = arith.maximumf %13, %14 : vector<128x64xf32>
    %16 = arith.truncf %15 : vector<128x64xf32> to vector<128x64xbf16>
    %c0_12 = arith.constant 0 : index
    %c0_13 = arith.constant 0 : index
    %17 = vector.load %arg6[%c0_12, %c0_13] : memref<64x16xbf16, #tpu.memory_space<vmem>>, vector<64x16xbf16>
    %cst_14 = arith.constant dense<0.000000e+00> : vector<128x16xf32>
    %18 = tpu.matmul %16, %17, %cst_14 {dimension_numbers = #tpu.dot_dimension_numbers<[1], [0], [0], [1], [0, 0, 1, 1], [], []>} : vector<128x64xbf16>, vector<64x16xbf16>, vector<128x16xf32> -> vector<128x16xf32>
    %c0_15 = arith.constant 0 : index
    %c0_16 = arith.constant 0 : index
    %19 = vector.load %arg7[%c0_15, %c0_16] : memref<1x16xf32, #tpu.memory_space<vmem>>, vector<1x16xf32>
    %20 = vector.broadcast %19 : vector<1x16xf32> to vector<128x16xf32>
    %21 = arith.addf %18, %20 : vector<128x16xf32>
    %22 = arith.truncf %21 : vector<128x16xf32> to vector<128x16xbf16>
    %c0_17 = arith.constant 0 : index
    %c0_18 = arith.constant 0 : index
    %23 = vector.load %arg8[%c0_17, %c0_18] : memref<16x64xbf16, #tpu.memory_space<vmem>>, vector<16x64xbf16>
    %cst_19 = arith.constant dense<0.000000e+00> : vector<128x64xf32>
    %24 = tpu.matmul %22, %23, %cst_19 {dimension_numbers = #tpu.dot_dimension_numbers<[1], [0], [0], [1], [0, 0, 1, 1], [], []>} : vector<128x16xbf16>, vector<16x64xbf16>, vector<128x64xf32> -> vector<128x64xf32>
    %c0_20 = arith.constant 0 : index
    %c0_21 = arith.constant 0 : index
    %25 = vector.load %arg9[%c0_20, %c0_21] : memref<1x64xf32, #tpu.memory_space<vmem>>, vector<1x64xf32>
    %26 = vector.broadcast %25 : vector<1x64xf32> to vector<128x64xf32>
    %27 = arith.addf %24, %26 : vector<128x64xf32>
    %cst_22 = arith.constant 0.000000e+00 : f32
    %28 = vector.broadcast %cst_22 : f32 to vector<128x64xf32>
    %29 = arith.maximumf %27, %28 : vector<128x64xf32>
    %30 = arith.truncf %29 : vector<128x64xf32> to vector<128x64xbf16>
    %c0_23 = arith.constant 0 : index
    %c0_24 = arith.constant 0 : index
    %31 = vector.load %arg10[%c0_23, %c0_24] : memref<64x128xbf16, #tpu.memory_space<vmem>>, vector<64x128xbf16>
    %cst_25 = arith.constant dense<0.000000e+00> : vector<128x128xf32>
    %32 = tpu.matmul %30, %31, %cst_25 {dimension_numbers = #tpu.dot_dimension_numbers<[1], [0], [0], [1], [0, 0, 1, 1], [], []>} : vector<128x64xbf16>, vector<64x128xbf16>, vector<128x128xf32> -> vector<128x128xf32>
    %c0_26 = arith.constant 0 : index
    %c0_27 = arith.constant 0 : index
    %33 = vector.load %arg11[%c0_26, %c0_27] : memref<1x128xf32, #tpu.memory_space<vmem>>, vector<1x128xf32>
    %34 = vector.broadcast %33 : vector<1x128xf32> to vector<128x128xf32>
    %35 = arith.addf %32, %34 : vector<128x128xf32>
    %cst_28 = arith.constant 0.000000e+00 : f32
    %36 = vector.broadcast %cst_28 : f32 to vector<128x128xf32>
    %37 = arith.maximumf %35, %36 : vector<128x128xf32>
    %38 = arith.truncf %37 : vector<128x128xf32> to vector<128x128xbf16>
    %c0_29 = arith.constant 0 : index
    %c0_30 = arith.constant 0 : index
    %39 = vector.load %arg12[%c0_29, %c0_30] : memref<128x128xbf16, #tpu.memory_space<vmem>>, vector<128x128xbf16>
    %cst_31 = arith.constant dense<0.000000e+00> : vector<128x128xf32>
    %40 = tpu.matmul %38, %39, %cst_31 {dimension_numbers = #tpu.dot_dimension_numbers<[1], [0], [0], [1], [0, 0, 1, 1], [], []>} : vector<128x128xbf16>, vector<128x128xbf16>, vector<128x128xf32> -> vector<128x128xf32>
    %c0_32 = arith.constant 0 : index
    %c0_33 = arith.constant 0 : index
    %41 = vector.load %arg13[%c0_32, %c0_33] : memref<1x128xf32, #tpu.memory_space<vmem>>, vector<1x128xf32>
    %42 = vector.broadcast %41 : vector<1x128xf32> to vector<128x128xf32>
    %43 = arith.addf %40, %42 : vector<128x128xf32>
    %c0_34 = arith.constant 0 : index
    %c0_35 = arith.constant 0 : index
    %44 = vector.load %arg14[%c0_34, %c0_35] : memref<128x128xf32, #tpu.memory_space<vmem>>, vector<128x128xf32>
    tpu.vector_store %arg14[%c0_34, %c0_35], %43 {strides = array<i32>} : memref<128x128xf32, #tpu.memory_space<vmem>>, vector<128x128xf32>,
    return
  }
  func.func @transform_0(%arg0: i32) -> (i32, i32) {
    %c0_i32 = arith.constant 0 : i32
    %c0_i32_0 = arith.constant 0 : i32
    return %arg0, %c0_i32 : i32, i32
  }
  func.func @transform_1(%arg0: i32) -> (i32, i32) {
    %c0_i32 = arith.constant 0 : i32
    %c0_i32_0 = arith.constant 0 : i32
    %c0_i32_1 = arith.constant 0 : i32
    return %c0_i32, %c0_i32_0 : i32, i32
  }
  func.func @transform_2(%arg0: i32) -> (i32, i32) {
    %c0_i32 = arith.constant 0 : i32
    %c0_i32_0 = arith.constant 0 : i32
    %c0_i32_1 = arith.constant 0 : i32
    return %c0_i32, %c0_i32_0 : i32, i32
  }
  func.func @transform_3(%arg0: i32) -> (i32, i32) {
    %c0_i32 = arith.constant 0 : i32
    %c0_i32_0 = arith.constant 0 : i32
    %c0_i32_1 = arith.constant 0 : i32
    return %c0_i32, %c0_i32_0 : i32, i32
  }
  func.func @transform_4(%arg0: i32) -> (i32, i32) {
    %c0_i32 = arith.constant 0 : i32
    %c0_i32_0 = arith.constant 0 : i32
    %c0_i32_1 = arith.constant 0 : i32
    return %c0_i32, %c0_i32_0 : i32, i32
  }
  func.func @transform_5(%arg0: i32) -> (i32, i32) {
    %c0_i32 = arith.constant 0 : i32
    %c0_i32_0 = arith.constant 0 : i32
    %c0_i32_1 = arith.constant 0 : i32
    return %c0_i32, %c0_i32_0 : i32, i32
  }
  func.func @transform_6(%arg0: i32) -> (i32, i32) {
    %c0_i32 = arith.constant 0 : i32
    %c0_i32_0 = arith.constant 0 : i32
    %c0_i32_1 = arith.constant 0 : i32
    return %c0_i32, %c0_i32_0 : i32, i32
  }
  func.func @transform_7(%arg0: i32) -> (i32, i32) {
    %c0_i32 = arith.constant 0 : i32
    %c0_i32_0 = arith.constant 0 : i32
    %c0_i32_1 = arith.constant 0 : i32
    return %c0_i32, %c0_i32_0 : i32, i32
  }
  func.func @transform_8(%arg0: i32) -> (i32, i32) {
    %c0_i32 = arith.constant 0 : i32
    %c0_i32_0 = arith.constant 0 : i32
    %c0_i32_1 = arith.constant 0 : i32
    return %c0_i32, %c0_i32_0 : i32, i32
  }
  func.func @transform_9(%arg0: i32) -> (i32, i32) {
    %c0_i32 = arith.constant 0 : i32
    %c0_i32_0 = arith.constant 0 : i32
    %c0_i32_1 = arith.constant 0 : i32
    return %c0_i32, %c0_i32_0 : i32, i32
  }
  func.func @transform_10(%arg0: i32) -> (i32, i32) {
    %c0_i32 = arith.constant 0 : i32
    %c0_i32_0 = arith.constant 0 : i32
    %c0_i32_1 = arith.constant 0 : i32
    return %c0_i32, %c0_i32_0 : i32, i32
  }
  func.func @transform_11(%arg0: i32) -> (i32, i32) {
    %c0_i32 = arith.constant 0 : i32
    %c0_i32_0 = arith.constant 0 : i32
    %c0_i32_1 = arith.constant 0 : i32
    return %c0_i32, %c0_i32_0 : i32, i32
  }
  func.func @transform_12(%arg0: i32) -> (i32, i32) {
    %c0_i32 = arith.constant 0 : i32
    %c0_i32_0 = arith.constant 0 : i32
    %c0_i32_1 = arith.constant 0 : i32
    return %c0_i32, %c0_i32_0 : i32, i32
  }
  func.func @transform_13(%arg0: i32) -> (i32, i32) {
    %c0_i32 = arith.constant 0 : i32
    %c0_i32_0 = arith.constant 0 : i32
    return %arg0, %c0_i32 : i32, i32
  }
}

</mosaic_0001>

<bundles_post_ra>
// kernel: tpu_custom_call.1
= control target key start
LH: loop header
LB: loop body
LE: loop exit
PB: predicated region body
PF: predicated region fallthrough
CT: control target
= control target key end

     0   :  { %s2291_s0 = inlined_call_operand.hbm [shape: bf16[256,128], index: 0, kind: input, shape index: {}]   ;;  %s2292_s1 = inlined_call_operand.vmem [shape: bf16[128,128], index: 1, kind: input, shape index: {}]   ;;  %s2293_s2 = inlined_call_operand.vmem [shape: f32[1,128], index: 2, kind: input, shape index: {}]   ;;  %s2294_s3 = inlined_call_operand.vmem [shape: bf16[128,64], index: 3, kind: input, shape index: {}]   ;;  %s2295_s4 = inlined_call_operand.vmem [shape: f32[1,64], index: 4, kind: input, shape index: {}]   ;;  %s2296_s5 = inlined_call_operand.vmem [shape: bf16[64,16], index: 5, kind: input, shape index: {}]   ;;  %s2297_s6 = inlined_call_operand.vmem [shape: f32[1,16], index: 6, kind: input, shape index: {}]   ;;  %s2298_s7 = inlined_call_operand.vmem [shape: bf16[16,64], index: 7, kind: input, shape index: {}]   ;;  %s2299_s8 = inlined_call_operand.vmem [shape: f32[1,64], index: 8, kind: input, shape index: {}]   ;;  %s2300_s9 = inlined_call_operand.vmem [shape: bf16[64,128], index: 9, kind: input, shape index: {}]   ;;  %s2301_s10 = inlined_call_operand.vmem [shape: f32[1,128], index: 10, kind: input, shape index: {}]   ;;  %s2302_s11 = inlined_call_operand.hbm [shape: bf16[128,128], index: 11, kind: input, shape index: {}]   ;;  %s2303_s12 = inlined_call_operand.vmem [shape: f32[1,128], index: 12, kind: input, shape index: {}]   ;;  %s2304_s13 = inlined_call_operand.hbm [shape: f32[256,128], index: 13, kind: output, shape index: {}]  }
   0x1   :  { %2311 = sst [smem:[#allocation15_spill]] %s2302_s11 }
   0x2   :  { %2312 = sst [smem:[#allocation16_spill]] %s2303_s12 }
   0x3   :  { %2313 = sst [smem:[#allocation17_spill]] %s2304_s13 }
   0x4   :  { %18 = vsyncpa [#allocation3], 0 }
   0x5   :  { %20 = vsyncpa [#allocation3 + $0x1], 0 }
   0x6   :  { %21 = vsyncpa [#allocation6], 0 }
   0x7   :  { %22 = vsyncpa [#allocation4], 0 }
   0x8   :  { %24 = vsyncpa [#allocation4 + $0x1], 0  ;;  %s1946_s25 = smov 0   ;;  %s1948_s26 = smov 0  }
   0x9   :  { %s1950_s27 = smov 0   ;;  %s1952_s28 = smov 0  }
   0xa LB: > { %2314 = sst [smem:[#allocation11_spill]] %s1857_s25  ;;  %s1967_s29 = sadd.s32 4294967295, %s1869_s28   ;;  %s1869_s28 = sphi %s1952_s28, %s2335_s28   ;;  %s1865_s27 = sphi %s1950_s27, %s2332_s27   ;;  %s1861_s26 = sphi %s1948_s26, %s2334_s26   ;;  %s1857_s25 = sphi %s1946_s25, %s2333_s25  }
   0xb   : > { %2315 = sst [smem:[#allocation12_spill]] %s1865_s27  ;;  %s1420_s30 = sadd.s32 4294967294, %s1869_s28  }
   0xc   : > { %p50_p0 = scmp.ne.s32.totalorder %s1861_s26, %s1857_s25  ;;  %p51_p1 = scmp.eq.s32.totalorder %s1967_s29, 0 }
   0xd   : > { %p326_p2 = scmp.eq.s32.totalorder %s1967_s29, 1  ;;  %p332_p3 = scmp.eq.s32.totalorder %s1420_s30, 1 }
   0xe   : > { %p1976_p4 = por %p51_p1, %p50_p0  ;;  %p1421_p5 = scmp.ge.s32.totalorder %s1869_s28, 1 }
   0xf   : > { %p1981_p6 = por %p332_p3, %p50_p0  ;;  %p339_p7 = scmp.lt.s32.totalorder %s1869_s28, 3 }
  0x10   : > { %s2319_s11 = sld [smem:[#allocation15_spill]]  ;;  %s1871_s20 = smov [#allocation5]  }
  0x11   : > { %s2317_s15 = scalar_select %p1981_p6, 1, 0 }
  0x12   : > { %p1989_p8 = pnand %p1421_p5, %p339_p7  ;;  %s382_s21 = sshll.u32 %s1871_s20, 4  ;;  %s383_s21 = int_to_ptr.vmem [resolvable:$true] %s382_s21 }
  0x13   : > { %2318 = sst [smem:[#allocation13_spill]] %s2317_s15  ;;  %s1999_s22 = sadd.s32 1, %s1869_s28  }
  0x14   : > { %p1680_p9 = pneg %p1989_p8  ;;  %s2308_s23 = smov 64  }
  0x15   : > { %s2309_s24 = smov 4   ;;  %s34_s30 = ssub.s32 %s1869_s28, %s1999_s22 }
  0x16   : > { %s380_s18 = sshll.u32 %s2319_s11, 4  ;;  %p1681_p10 = pnand %p1680_p9, %p51_p1  ;;  %s381_s18 = int_to_ptr.hbm [resolvable:$true] %s380_s18 }
  0x17   : > { %s37_s16 = sadd.s32 1, %s1865_s27  ;;  %p35_p12 = scmp.eq.s32.totalorder %s34_s30, 0 }
  0x18   : > { %1683 = dma.hbm_to_vmem [thread:$0]  (!%p1681_p10), %s381_s18, 1024, %s383_s21, [#allocation6], %s2308_s23, %s2308_s23, %s2309_s24  }
  0x19   : > { %p44_p13 = scmp.ne.s32.totalorder %s1865_s27, %s1861_s26  ;;  %p45_p0 = scmp.eq.s32.totalorder %s1869_s28, 0 }
  0x1a   : > { %s2011_s17 = scalar_select %p35_p12, %s1865_s27, %s37_s16  }
  0x1b   : > { %p2015_p3 = por %p326_p2, %p44_p13  ;;  %p1693_p5 = scmp.lt.s32.totalorder %s1869_s28, 2 }
  0x1c   : > { %2321 = sst [smem:[#allocation14_spill]] %s2011_s17  ;;  %s399_s11 = sand.u32 1, %s1865_s27  }
  0x1d   : > { %s1624_s15 = sshll.u32 %s1869_s28, 6  ;;  %p46_p7 = por %p45_p0, %p44_p13 }
  0x1e   : > { %s1424_s25 = sshll.u32 %s399_s11, 6  ;;  %s408_s18 = scalar_lea.hbm %s2291_s0, %s1624_s15 }
  0x1f   : > { %s409_s21 = sshll.u32 %s408_s18, 4  ;;  %s403_s30 = scalar_lea.vmem [#allocation2], %s1424_s25  ;;  %s410_s21 = int_to_ptr.hbm [resolvable:$true] %s409_s21 }
  0x20   : > { %s411_s23 = sshll.u32 %s403_s30, 4  ;;  %p2025_p9 = pnand %p1693_p5, %p46_p7  ;;  %s412_s23 = int_to_ptr.vmem [resolvable:$true] %s411_s23 }
  0x21   : > { %s400_s24 = scalar_lea.sflag [#allocation3], %s399_s11  ;;  %s1769_s17 = sshra.s32 %s410_s21, 4  ;;  %s1770_s17 = int_to_ptr.hbm [resolvable:$true] %s1769_s17 }
  0x22   : > { %s1771_s27 = scalar_lea.hbm %s1770_s17, 64  ;;  %p1773_p10 = pneg %p2025_p9 }
  0x23   : > { %p1772_p2 = scmp.ne.s32.totalorder %s1770_s17, %s1771_s27  ;;  %s1776_s25 = scalar_lea.hbm %s2291_s0, 128 }
  0x24   : > { %p1777_p0 = scmp.lt.s32.totalorder %s1770_s17, %s2291_s0  ;;  %p1778_p5 = scmp.lt.s32.totalorder %s1776_s25, %s1771_s27 }
  0x25   : > { %p1774_p12 = pnand %p1773_p10, %p1772_p2 }
  0x26   : > { %p1779_p7 = por %p1778_p5, %p1777_p0 }
  0x27   : > { %p1775_p13 = pneg %p1774_p12 }
  0x29   : > { %p1780_p11 = pnand %p1779_p7, %p1775_p13 }
  0x2b   : > { %1783 = shalt.err (!%p1780_p11)
}
  0x2c   : > { %s2324_s11 = smov 4   ;;  %s2325_s30 = smov 64  }
  0x2d   : > { %1687 = dma.hbm_to_vmem [thread:$0]  (!%p2025_p9), %s410_s21, 1024, %s412_s23, %s400_s24, %s2325_s30, %s2325_s30, %s2324_s11  }
  0x2e   : > { %423 = sbr.rel (%p1989_p8) target bundleno = 1060 (0x424), region = 72  ;;  %s2045_s12 = sand.u32 (!%p1989_p8), 1, %s1861_s26  }
  0x2f   : > { %s1428_s17 = sshll.u32 (!%p1989_p8), %s2045_s12, 6  ;;  %s426_s27 = scalar_lea.sflag (!%p1989_p8), [#allocation3], %s2045_s12 }
  0x30   : > { %s2049_s13 = scalar_lea.vmem (!%p1989_p8), [#allocation2], %s1428_s17 }
  0x33   : > { %1844 = dma.done.wait (%p1976_p4), %s426_s27, 1024  }
  0x34   : > { %1846 = vsyncadd (%p1976_p4), %s426_s27, 4294966272 }
  0x35   : > { %1848 = dma.done.wait (%p51_p1), [#allocation6], 1024  }
  0x36   : > { %1850 = vsyncadd (%p51_p1), [#allocation6], 4294966272  ;;  %v1640_v0 = vld [vmem:[%s2292_s1 + $0x38] sm:$0xff]  ;;  %v1639_v1 = vld [vmem:[%s2292_s1 + $0x30] sm:$0xff]  ;;  %vm863_vm0 = vcmask 523264   ;;  %vm957_vm1 = vcmask 130048  }
  0x37   : > { %613 = vmatpush.bf16.msra.mxu0 %v1640_v0  ;;  %v1638_v2 = vld [vmem:[%s2292_s1 + $0x28] sm:$0xff]  ;;  %v1637_v3 = vld [vmem:[%s2292_s1 + $0x20] sm:$0xff]  ;;  %v1636_v4 = vld [vmem:[%s2292_s1 + $0x18] sm:$0xff]  ;;  %s1430_s25 = sshll.u32 %s2045_s12, 7  ;;  %s2326_s11 = sld [smem:[#allocation16_spill]] }
  0x38   : > { %v1635_v5 = vld [vmem:[%s2292_s1 + $0x10] sm:$0xff]  ;;  %v1634_v6 = vld [vmem:[%s2292_s1 + $0x8] sm:$0xff]  ;;  %v1633_v7 = vld [vmem:[%s2292_s1] sm:$0xff]  ;;  %s1666_s30 = sshll.u32 %s1967_s29, 7  ;;  %s2327_s19 = sld [smem:[#allocation17_spill]] }
  0x39   : > { %v1625_v8 = vld [vmem:[%s2049_s13] sm:$0xff]  ;;  %v1626_v9 = vld [vmem:[%s2049_s13 + $0x8] sm:$0xff]  ;;  %v1627_v10 = vld [vmem:[%s2049_s13 + $0x10] sm:$0xff]  ;;  %s1322_s14 = scalar_lea.sflag [#allocation4], %s2045_s12 }
  0x3a   : > { %v1628_v11 = vld [vmem:[%s2049_s13 + $0x18] sm:$0xff]  ;;  %v1629_v12 = vld [vmem:[%s2049_s13 + $0x20] sm:$0xff]  ;;  %v1630_v14 = vld [vmem:[%s2049_s13 + $0x28] sm:$0xff] }
  0x3b   : > { %614 = vmatpush.bf16.msra.mxu0 %v1639_v1  ;;  %v1648_v13 = vld [vmem:[%s2294_s3 + $0x38] sm:$0xff]  ;;  %v1647_v15 = vld [vmem:[%s2294_s3 + $0x30] sm:$0xff]  ;;  %v1646_v16 = vld [vmem:[%s2294_s3 + $0x28] sm:$0xff] }
  0x3c   : > { %754 = vmatpush.bf16.msra.mxu1 %v1648_v13  ;;  %v1645_v17 = vld [vmem:[%s2294_s3 + $0x20] sm:$0xff]  ;;  %v1644_v18 = vld [vmem:[%s2294_s3 + $0x18] sm:$0xff]  ;;  %v1631_v19 = vld [vmem:[%s2049_s13 + $0x30] sm:$0xff] }
  0x3d   : > { %v1643_v20 = vld [vmem:[%s2294_s3 + $0x10] sm:$0xff]  ;;  %v1642_v21 = vld [vmem:[%s2294_s3 + $0x8] sm:$0xff]  ;;  %v1641_v22 = vld [vmem:[%s2294_s3] sm:$0xff] }
  0x3e   : > { %v1632_v23 = vld [vmem:[%s2049_s13 + $0x38] sm:$0xff]  ;;  %v2118_v25 = vld [vmem:[%s2293_s2] ss:$0 sm:$0xff]  ;;  %v1651_v41 = vld [vmem:[%s2296_s5 + $0x10] sm:$0xff]  ;;  %s2239_s13 = scalar_lea.vmem [#allocation7], %s1430_s25  ;;  %s1333_s23 = scalar_lea.hbm %s2327_s19, %s1666_s30 }
  0x3f   : > { %615 = vmatpush.bf16.msra.mxu0 %v1638_v2  ;;  %v1652_v26 = vld [vmem:[%s2296_s5 + $0x18] sm:$0xff]  ;;  %v1650_v56 = vld [vmem:[%s2296_s5 + $0x8] sm:$0xff]  ;;  %s1334_s24 = sshll.u32 %s2239_s13, 4  ;;  %s1336_s21 = sshll.u32 %s1333_s23, 4  ;;  %s1335_s24 = int_to_ptr.vmem [resolvable:$true] %s1334_s24  ;;  %s1337_s21 = int_to_ptr.hbm [resolvable:$true] %s1336_s21 }
  0x40   : > { %755 = vmatpush.bf16.msra.mxu1 %v1647_v15  ;;  %1667 = vmatpush.bf16.msra.mxu2 %v1652_v26  ;;  %s1813_s16 = sshra.s32 %s1337_s21, 4  ;;  %s1819_s18 = scalar_lea.hbm %s2327_s19, 256  ;;  %s1814_s16 = int_to_ptr.hbm [resolvable:$true] %s1813_s16 }
  0x41   : > { %s1815_s25 = scalar_lea.hbm %s1814_s16, 128  ;;  %p1820_p11 = scmp.lt.s32.totalorder %s1814_s16, %s2327_s19 }
  0x42   : > { %p1816_p1 = scmp.ne.s32.totalorder %s1814_s16, %s1815_s25  ;;  %p1821_p9 = scmp.lt.s32.totalorder %s1819_s18, %s1815_s25 }
  0x43   : > { %616 = vmatpush.bf16.msra.mxu0 %v1637_v3 }
  0x44   : > { %756 = vmatpush.bf16.msra.mxu1 %v1646_v16  ;;  %1668 = vmatpush.bf16.msra.mxu2 %v1651_v41  ;;  %p1817_p4 = pnand %p1816_p1, %p2015_p3  ;;  %p1822_p2 = por %p1821_p9, %p1820_p11 }
  0x46   : > { %p1818_p8 = pneg %p1817_p4 }
  0x47   : > { %617 = vmatpush.bf16.msra.mxu0 %v1636_v4 }
  0x48   : > { %757 = vmatpush.bf16.msra.mxu1 %v1645_v17  ;;  %1669 = vmatpush.bf16.msra.mxu2 %v1650_v56  ;;  %p1823_p10 = pnand %p1822_p2, %p1818_p8 }
  0x4b   : > { %618 = vmatpush.bf16.msra.mxu0 %v1635_v5 }
  0x4c   : > { %758 = vmatpush.bf16.msra.mxu1 %v1644_v18 }
  0x4f   : > { %619 = vmatpush.bf16.msra.mxu0 %v1634_v6  ;;  %v1649_v6 = vld [vmem:[%s2296_s5] sm:$0xff] }
  0x50   : > { %759 = vmatpush.bf16.msra.mxu1 %v1643_v20  ;;  %1670 = vmatpush.bf16.msra.mxu2 %v1649_v6 }
  0x53   : > { %620 = vmatpush.bf16.msra.mxu0 %v1633_v7 }
  0x54   : > { %760 = vmatpush.bf16.msra.mxu1 %v1642_v21 }
  0x56   : > { %621 = vmatmul.bf16.vlgmr.msra.gmra.mxu0 %v1625_v8 }
  0x57   : > { %892 = vmatpush.bf16.msrb.mxu0 %v1652_v26 }
  0x58   : > { %761 = vmatpush.bf16.msra.mxu1 %v1641_v22  ;;  %v2151_v22 = vld [vmem:[%s2295_s4] ss:$0 sm:$0xff] }
  0x5b   : > { %893 = vmatpush.bf16.msrb.mxu0 %v1651_v41 }
  0x5f   : > { %894 = vmatpush.bf16.msrb.mxu0 %v1650_v56 }
  0x63   : > { %895 = vmatpush.bf16.msrb.mxu0 %v1649_v6 }
  0x66   : > { %626 = vmatmul.bf16.gmra.mxu0 %v1626_v9 }
  0x76   : > { %631 = vmatmul.bf16.gmra.mxu0 %v1627_v10 }
  0x86   : > { %636 = vmatmul.bf16.gmra.mxu0 %v1628_v11 }
  0x96   : > { %641 = vmatmul.bf16.gmra.mxu0 %v1629_v12 }
  0xa6   : > { %646 = vmatmul.bf16.gmra.mxu0 %v1630_v14 }
  0xb6   : > { %651 = vmatmul.bf16.gmra.mxu0 %v1631_v19 }
  0xc6   : > { %656 = vmatmul.bf16.gmra.mxu0 %v1632_v23  ;;  %v1653_v23 = vld [vmem:[%s2298_s7] sm:$0xff] }
  0xc7   : > { %989 = vmatpush.bf16.msrb.mxu1 %v1653_v23  ;;  %1671 = vmatpush.bf16.msra.mxu3 %v1653_v23 }
  0xd3   : > { %v622_v24 = vpop.f32.mrf.mxu0 }
  0xd4   : > { %v623_v27 = vadd.f32 %v2118_v25, %v622_v24 }
  0xd6   : > { %v662_v30 = vmax.f32 %v623_v27, 0.0 }
  0xdb   : > { %v624_v28 = vpop.f32.mrf.mxu0 }
  0xdc   : > { %v625_v29 = vadd.f32 %v2118_v25, %v624_v28 }
  0xde   : > { %v663_v31 = vmax.f32 %v625_v29, 0.0 }
  0xe0   : > { %v678_v32 = vpack.c.bf16 %v663_v31, %v662_v30 }
  0xe2   : > { %762 = vmatmul.bf16.vlgmr.msra.gmra.mxu1 %v678_v32 }
  0xe3   : > { %v627_v33 = vpop.f32.mrf.mxu0 }
  0xe4   : > { %v628_v34 = vadd.f32 %v2118_v25, %v627_v33 }
  0xe6   : > { %v664_v37 = vmax.f32 %v628_v34, 0.0 }
  0xeb   : > { %v629_v35 = vpop.f32.mrf.mxu0 }
  0xec   : > { %v630_v36 = vadd.f32 %v2118_v25, %v629_v35 }
  0xee   : > { %v665_v38 = vmax.f32 %v630_v36, 0.0 }
  0xf0   : > { %v679_v39 = vpack.c.bf16 %v665_v38, %v664_v37 }
  0xf2   : > { %767 = vmatmul.bf16.gmra.mxu1 %v679_v39 }
  0xf3   : > { %v632_v40 = vpop.f32.mrf.mxu0 }
  0xf4   : > { %v633_v42 = vadd.f32 %v2118_v25, %v632_v40 }
  0xf6   : > { %v666_v45 = vmax.f32 %v633_v42, 0.0 }
  0xfb   : > { %v634_v43 = vpop.f32.mrf.mxu0 }
  0xfc   : > { %v635_v44 = vadd.f32 %v2118_v25, %v634_v43 }
  0xfe   : > { %v667_v46 = vmax.f32 %v635_v44, 0.0 }
 0x100   : > { %v680_v47 = vpack.c.bf16 %v667_v46, %v666_v45 }
 0x102   : > { %772 = vmatmul.bf16.gmra.mxu1 %v680_v47 }
 0x103   : > { %v637_v48 = vpop.f32.mrf.mxu0 }
 0x104   : > { %v638_v49 = vadd.f32 %v2118_v25, %v637_v48 }
 0x106   : > { %v668_v52 = vmax.f32 %v638_v49, 0.0 }
 0x10b   : > { %v639_v50 = vpop.f32.mrf.mxu0 }
 0x10c   : > { %v640_v51 = vadd.f32 %v2118_v25, %v639_v50 }
 0x10e   : > { %v669_v53 = vmax.f32 %v640_v51, 0.0 }
 0x110   : > { %v681_v54 = vpack.c.bf16 %v669_v53, %v668_v52 }
 0x112   : > { %777 = vmatmul.bf16.gmra.mxu1 %v681_v54 }
 0x113   : > { %v642_v55 = vpop.f32.mrf.mxu0 }
 0x114   : > { %v643_v57 = vadd.f32 %v2118_v25, %v642_v55 }
 0x116   : > { %v670_v60 = vmax.f32 %v643_v57, 0.0 }
 0x11b   : > { %v644_v58 = vpop.f32.mrf.mxu0 }
 0x11c   : > { %v645_v59 = vadd.f32 %v2118_v25, %v644_v58 }
 0x11e   : > { %v671_v61 = vmax.f32 %v645_v59, 0.0 }
 0x120   : > { %v682_v62 = vpack.c.bf16 %v671_v61, %v670_v60 }
 0x122   : > { %782 = vmatmul.bf16.gmra.mxu1 %v682_v62 }
 0x123   : > { %v647_v63 = vpop.f32.mrf.mxu0 }
 0x124   : > { %v648_v0 = vadd.f32 %v2118_v25, %v647_v63 }
 0x126   : > { %v672_v3 = vmax.f32 %v648_v0, 0.0 }
 0x12b   : > { %v649_v1 = vpop.f32.mrf.mxu0 }
 0x12c   : > { %v650_v2 = vadd.f32 %v2118_v25, %v649_v1 }
 0x12e   : > { %v673_v4 = vmax.f32 %v650_v2, 0.0 }
 0x130   : > { %v683_v5 = vpack.c.bf16 %v673_v4, %v672_v3 }
 0x132   : > { %787 = vmatmul.bf16.gmra.mxu1 %v683_v5 }
 0x133   : > { %v652_v7 = vpop.f32.mrf.mxu0 }
 0x134   : > { %v653_v8 = vadd.f32 %v2118_v25, %v652_v7 }
 0x136   : > { %v674_v11 = vmax.f32 %v653_v8, 0.0 }
 0x13b   : > { %v654_v9 = vpop.f32.mrf.mxu0 }
 0x13c   : > { %v655_v10 = vadd.f32 %v2118_v25, %v654_v9 }
 0x13e   : > { %v675_v12 = vmax.f32 %v655_v10, 0.0 }
 0x140   : > { %v684_v13 = vpack.c.bf16 %v675_v12, %v674_v11 }
 0x142   : > { %792 = vmatmul.bf16.gmra.mxu1 %v684_v13 }
 0x143   : > { %v657_v14 = vpop.f32.mrf.mxu0 }
 0x144   : > { %v658_v15 = vadd.f32 %v2118_v25, %v657_v14 }
 0x146   : > { %v676_v18 = vmax.f32 %v658_v15, 0.0 }
 0x14b   : > { %v659_v16 = vpop.f32.mrf.mxu0 }
 0x14c   : > { %v660_v17 = vadd.f32 %v2118_v25, %v659_v16  ;;  %v1735_v16 = vld [vmem:[%s2297_s6] ss:$0 sm:$0xff] }
 0x14e   : > { %v677_v19 = vmax.f32 %v660_v17, 0.0 }
 0x150   : > { %v685_v20 = vpack.c.bf16 %v677_v19, %v676_v18 }
 0x152   : > { %797 = vmatmul.bf16.gmra.mxu1 %v685_v20 }
 0x15f   : > { %v763_v21 = vpop.f32.mrf.mxu1 }
 0x160   : > { %v764_v24 = vadd.f32 %v2151_v22, %v763_v21 }
 0x162   : > { %v803_v27 = vmax.f32 %v764_v24, 0.0 }
 0x167   : > { %v765_v26 = vpop.f32.mrf.mxu1 }
 0x168   : > { %v766_v25 = vadd.f32 %v2151_v22, %v765_v26 }
 0x16a   : > { %v804_v28 = vmax.f32 %v766_v25, 0.0 }
 0x16c   : > { %v819_v29 = vpack.c.bf16 %v804_v28, %v803_v27  ;;  %v1657_v27 = vld [vmem:[%s2300_s9 + $0x18] sm:$0xff] }
 0x16d   : > { %1119 = vmatpush.bf16.msrb.mxu3 %v1657_v27 }
 0x16e   : > { %1543 = vmatmul.msk.bf16.vlgmr.msrb.gmra.mxu0 %vm863_vm0, %v819_v29 }
 0x16f   : > { %v768_v30 = vpop.f32.mrf.mxu1 }
 0x170   : > { %v769_v31 = vadd.f32 %v2151_v22, %v768_v30 }
 0x172   : > { %v805_v34 = vmax.f32 %v769_v31, 0.0 }
 0x177   : > { %v770_v32 = vpop.f32.mrf.mxu1 }
 0x178   : > { %v771_v33 = vadd.f32 %v2151_v22, %v770_v32 }
 0x17a   : > { %v806_v35 = vmax.f32 %v771_v33, 0.0  ;;  %v1656_v33 = vld [vmem:[%s2300_s9 + $0x10] sm:$0xff] }
 0x17b   : > { %1120 = vmatpush.bf16.msrb.mxu3 %v1656_v33 }
 0x17c   : > { %v820_v36 = vpack.c.bf16 %v806_v35, %v805_v34 }
 0x17e   : > { %1544 = vmatmul.msk.bf16.gmra.mxu0 %vm863_vm0, %v820_v36 }
 0x17f   : > { %v773_v37 = vpop.f32.mrf.mxu1 }
 0x180   : > { %v774_v38 = vadd.f32 %v2151_v22, %v773_v37 }
 0x182   : > { %v807_v41 = vmax.f32 %v774_v38, 0.0 }
 0x187   : > { %v775_v39 = vpop.f32.mrf.mxu1 }
 0x188   : > { %v776_v40 = vadd.f32 %v2151_v22, %v775_v39 }
 0x18a   : > { %v808_v42 = vmax.f32 %v776_v40, 0.0 }
 0x18c   : > { %v821_v43 = vpack.c.bf16 %v808_v42, %v807_v41 }
 0x18e   : > { %1545 = vmatmul.msk.bf16.gmra.mxu0 %vm863_vm0, %v821_v43  ;;  %v1655_v43 = vld [vmem:[%s2300_s9 + $0x8] sm:$0xff] }
 0x18f   : > { %v778_v44 = vpop.f32.mrf.mxu1  ;;  %1121 = vmatpush.bf16.msrb.mxu3 %v1655_v43  ;;  %v1661_v43 = vld [vmem:[#allocation5 + $0x18] sm:$0xff] }
 0x190   : > { %v779_v45 = vadd.f32 %v2151_v22, %v778_v44 }
 0x192   : > { %v809_v48 = vmax.f32 %v779_v45, 0.0 }
 0x197   : > { %v780_v46 = vpop.f32.mrf.mxu1 }
 0x198   : > { %v781_v47 = vadd.f32 %v2151_v22, %v780_v46 }
 0x19a   : > { %v810_v49 = vmax.f32 %v781_v47, 0.0 }
 0x19c   : > { %v822_v50 = vpack.c.bf16 %v810_v49, %v809_v48 }
 0x19e   : > { %1546 = vmatmul.msk.bf16.vlgmr.msra.gmra.mxu2 %vm863_vm0, %v822_v50  ;;  %v1654_v50 = vld [vmem:[%s2300_s9] sm:$0xff] }
 0x19f   : > { %v783_v51 = vpop.f32.mrf.mxu1  ;;  %1122 = vmatpush.bf16.msrb.mxu3 %v1654_v50 }
 0x1a0   : > { %v784_v52 = vadd.f32 %v2151_v22, %v783_v51 }
 0x1a2   : > { %v811_v55 = vmax.f32 %v784_v52, 0.0 }
 0x1a7   : > { %v785_v53 = vpop.f32.mrf.mxu1 }
 0x1a8   : > { %v786_v54 = vadd.f32 %v2151_v22, %v785_v53 }
 0x1aa   : > { %v812_v56 = vmax.f32 %v786_v54, 0.0 }
 0x1ac   : > { %v823_v57 = vpack.c.bf16 %v812_v56, %v811_v55 }
 0x1ae   : > { %1547 = vmatmul.msk.bf16.gmra.mxu2 %vm863_vm0, %v823_v57 }
 0x1af   : > { %v788_v58 = vpop.f32.mrf.mxu1 }
 0x1b0   : > { %v789_v59 = vadd.f32 %v2151_v22, %v788_v58 }
 0x1b2   : > { %v813_v62 = vmax.f32 %v789_v59, 0.0 }
 0x1b7   : > { %v790_v60 = vpop.f32.mrf.mxu1 }
 0x1b8   : > { %v791_v61 = vadd.f32 %v2151_v22, %v790_v60 }
 0x1ba   : > { %v814_v63 = vmax.f32 %v791_v61, 0.0  ;;  %v2206_v61 = vld [vmem:[%s2299_s8] ss:$0 sm:$0xff] }
 0x1bc   : > { %v824_v0 = vpack.c.bf16 %v814_v63, %v813_v62 }
 0x1be   : > { %1548 = vmatmul.msk.bf16.gmra.mxu2 %vm863_vm0, %v824_v0 }
 0x1bf   : > { %v793_v1 = vpop.f32.mrf.mxu1 }
 0x1c0   : > { %v794_v2 = vadd.f32 %v2151_v22, %v793_v1 }
 0x1c2   : > { %v815_v5 = vmax.f32 %v794_v2, 0.0 }
 0x1c7   : > { %v795_v3 = vpop.f32.mrf.mxu1 }
 0x1c8   : > { %v796_v4 = vadd.f32 %v2151_v22, %v795_v3 }
 0x1ca   : > { %v816_v6 = vmax.f32 %v796_v4, 0.0 }
 0x1cc   : > { %v825_v7 = vpack.c.bf16 %v816_v6, %v815_v5 }
 0x1ce   : > { %1549 = vmatmul.msk.bf16.gmra.mxu2 %vm863_vm0, %v825_v7 }
 0x1cf   : > { %v798_v8 = vpop.f32.mrf.mxu1 }
 0x1d0   : > { %v799_v9 = vadd.f32 %v2151_v22, %v798_v8 }
 0x1d2   : > { %v817_v12 = vmax.f32 %v799_v9, 0.0 }
 0x1d7   : > { %v800_v10 = vpop.f32.mrf.mxu1 }
 0x1d8   : > { %v801_v11 = vadd.f32 %v2151_v22, %v800_v10 }
 0x1da   : > { %v818_v13 = vmax.f32 %v801_v11, 0.0 }
 0x1dc   : > { %v826_v14 = vpack.c.bf16 %v818_v13, %v817_v12 }
 0x1de   : > { %1550 = vmatmul.msk.bf16.gmra.mxu2 %vm863_vm0, %v826_v14 }
 0x1eb   : > { %v897_v15 = vpop.f32.mrf.mxu0 }
 0x1ec   : > { %v898_v18 = vadd.f32 %v1735_v16, %v897_v15 }
 0x1f3   : > { %v899_v17 = vpop.f32.mrf.mxu0 }
 0x1f4   : > { %v900_v19 = vadd.f32 %v1735_v16, %v899_v17 }
 0x1f6   : > { %v937_v20 = vpack.c.bf16 %v900_v19, %v898_v18  ;;  %v1665_v19 = vld [vmem:[#allocation5 + $0x38] sm:$0xff] }
 0x1f7   : > { %1256 = vmatpush.bf16.msrb.mxu2 %v1665_v19 }
 0x1f8   : > { %1555 = vmatmul.msk.bf16.vlgmr.msrb.gmra.mxu1 %vm957_vm1, %v937_v20 }
 0x1fb   : > { %v902_v21 = vpop.f32.mrf.mxu0 }
 0x1fc   : > { %v903_v22 = vadd.f32 %v1735_v16, %v902_v21 }
 0x203   : > { %v904_v23 = vpop.f32.mrf.mxu0 }
 0x204   : > { %v905_v24 = vadd.f32 %v1735_v16, %v904_v23 }
 0x206   : > { %v938_v26 = vpack.c.bf16 %v905_v24, %v903_v22 }
 0x208   : > { %1556 = vmatmul.msk.bf16.gmra.mxu1 %vm957_vm1, %v938_v26 }
 0x20b   : > { %v907_v25 = vpop.f32.mrf.mxu0 }
 0x20c   : > { %v908_v29 = vadd.f32 %v1735_v16, %v907_v25  ;;  %v1664_v25 = vld [vmem:[#allocation5 + $0x30] sm:$0xff] }
 0x20d   : > { %1257 = vmatpush.bf16.msrb.mxu2 %v1664_v25 }
 0x213   : > { %v909_v28 = vpop.f32.mrf.mxu0 }
 0x214   : > { %v910_v30 = vadd.f32 %v1735_v16, %v909_v28  ;;  %v1663_v28 = vld [vmem:[#allocation5 + $0x28] sm:$0xff] }
 0x215   : > { %1258 = vmatpush.bf16.msrb.mxu2 %v1663_v28 }
 0x216   : > { %v939_v31 = vpack.c.bf16 %v910_v30, %v908_v29 }
 0x218   : > { %1557 = vmatmul.msk.bf16.vlgmr.msra.gmra.mxu3 %vm957_vm1, %v939_v31 }
 0x221   : > { %v912_v32 = vpop.f32.mrf.mxu2 }
 0x222   : > { %v913_v35 = vadd.f32 %v1735_v16, %v912_v32 }
 0x229   : > { %v914_v34 = vpop.f32.mrf.mxu2 }
 0x22a   : > { %v915_v36 = vadd.f32 %v1735_v16, %v914_v34 }
 0x22c   : > { %v940_v37 = vpack.c.bf16 %v915_v36, %v913_v35  ;;  %v1662_v35 = vld [vmem:[#allocation5 + $0x20] sm:$0xff] }
 0x22d   : > { %1259 = vmatpush.bf16.msrb.mxu2 %v1662_v35 }
 0x22e   : > { %1558 = vmatmul.msk.bf16.gmra.mxu3 %vm957_vm1, %v940_v37 }
 0x231   : > { %v917_v38 = vpop.f32.mrf.mxu2  ;;  %1260 = vmatpush.bf16.msrb.mxu2 %v1661_v43 }
 0x232   : > { %v918_v40 = vadd.f32 %v1735_v16, %v917_v38 }
 0x239   : > { %v919_v39 = vpop.f32.mrf.mxu2 }
 0x23a   : > { %v920_v41 = vadd.f32 %v1735_v16, %v919_v39 }
 0x23c   : > { %v941_v42 = vpack.c.bf16 %v920_v41, %v918_v40 }
 0x23e   : > { %1559 = vmatmul.msk.bf16.gmra.mxu3 %vm957_vm1, %v941_v42 }
 0x241   : > { %v922_v44 = vpop.f32.mrf.mxu2 }
 0x242   : > { %v923_v46 = vadd.f32 %v1735_v16, %v922_v44  ;;  %v1660_v44 = vld [vmem:[#allocation5 + $0x10] sm:$0xff] }
 0x243   : > { %1261 = vmatpush.bf16.msrb.mxu2 %v1660_v44 }
 0x249   : > { %v924_v45 = vpop.f32.mrf.mxu2 }
 0x24a   : > { %v925_v47 = vadd.f32 %v1735_v16, %v924_v45 }
 0x24c   : > { %v942_v48 = vpack.c.bf16 %v925_v47, %v923_v46 }
 0x24e   : > { %1560 = vmatmul.msk.bf16.gmra.mxu3 %vm957_vm1, %v942_v48 }
 0x251   : > { %v927_v49 = vpop.f32.mrf.mxu2 }
 0x252   : > { %v928_v52 = vadd.f32 %v1735_v16, %v927_v49  ;;  %v1659_v49 = vld [vmem:[#allocation5 + $0x8] sm:$0xff] }
 0x253   : > { %1262 = vmatpush.bf16.msrb.mxu2 %v1659_v49 }
 0x259   : > { %v929_v51 = vpop.f32.mrf.mxu2 }
 0x25a   : > { %v930_v53 = vadd.f32 %v1735_v16, %v929_v51 }
 0x25c   : > { %v943_v54 = vpack.c.bf16 %v930_v53, %v928_v52 }
 0x25e   : > { %1561 = vmatmul.msk.bf16.gmra.mxu3 %vm957_vm1, %v943_v54  ;;  %v1658_v54 = vld [vmem:[#allocation5] sm:$0xff] }
 0x25f   : > { %1263 = vmatpush.bf16.msrb.mxu2 %v1658_v54  ;;  %v1738_v54 = vld [vmem:[%s2326_s11] ss:$0 sm:$0xff] }
 0x261   : > { %v932_v55 = vpop.f32.mrf.mxu2 }
 0x262   : > { %v933_v57 = vadd.f32 %v1735_v16, %v932_v55 }
 0x269   : > { %v934_v56 = vpop.f32.mrf.mxu2 }
 0x26a   : > { %v935_v58 = vadd.f32 %v1735_v16, %v934_v56 }
 0x26c   : > { %v944_v59 = vpack.c.bf16 %v935_v58, %v933_v57 }
 0x26e   : > { %1562 = vmatmul.msk.bf16.gmra.mxu3 %vm957_vm1, %v944_v59 }
 0x275   : > { %v991_v60 = vpop.f32.mrf.mxu1 }
 0x276   : > { %v992_v62 = vadd.f32 %v2206_v61, %v991_v60 }
 0x278   : > { %v1031_v1 = vmax.f32 %v992_v62, 0.0 }
 0x27d   : > { %v993_v63 = vpop.f32.mrf.mxu1 }
 0x27e   : > { %v994_v0 = vadd.f32 %v2206_v61, %v993_v63  ;;  %v1737_v63 = vld [vmem:[%s2301_s10] ss:$0 sm:$0xff] }
 0x280   : > { %v1032_v2 = vmax.f32 %v994_v0, 0.0 }
 0x282   : > { %v1047_v3 = vpack.c.bf16 %v1032_v2, %v1031_v1 }
 0x284   : > { %1579 = vmatmul.msk.bf16.vlgmr.msrb.gmra.mxu3 %vm863_vm0, %v1047_v3 }
 0x285   : > { %v996_v4 = vpop.f32.mrf.mxu1 }
 0x286   : > { %v997_v5 = vadd.f32 %v2206_v61, %v996_v4 }
 0x288   : > { %v1033_v8 = vmax.f32 %v997_v5, 0.0 }
 0x28d   : > { %v998_v6 = vpop.f32.mrf.mxu1 }
 0x28e   : > { %v999_v7 = vadd.f32 %v2206_v61, %v998_v6 }
 0x290   : > { %v1034_v9 = vmax.f32 %v999_v7, 0.0 }
 0x292   : > { %v1048_v10 = vpack.c.bf16 %v1034_v9, %v1033_v8 }
 0x294   : > { %1580 = vmatmul.msk.bf16.gmra.mxu3 %vm863_vm0, %v1048_v10 }
 0x29b   : > { %v1001_v11 = vpop.f32.mrf.mxu3 }
 0x29c   : > { %v1002_v12 = vadd.f32 %v2206_v61, %v1001_v11 }
 0x29e   : > { %v1035_v15 = vmax.f32 %v1002_v12, 0.0 }
 0x2a3   : > { %v1003_v13 = vpop.f32.mrf.mxu3 }
 0x2a4   : > { %v1004_v14 = vadd.f32 %v2206_v61, %v1003_v13 }
 0x2a6   : > { %v1036_v16 = vmax.f32 %v1004_v14, 0.0 }
 0x2a8   : > { %v1049_v17 = vpack.c.bf16 %v1036_v16, %v1035_v15 }
 0x2aa   : > { %1581 = vmatmul.msk.bf16.gmra.mxu3 %vm863_vm0, %v1049_v17 }
 0x2b1   : > { %v1006_v18 = vpop.f32.mrf.mxu3 }
 0x2b2   : > { %v1007_v20 = vadd.f32 %v2206_v61, %v1006_v18 }
 0x2b4   : > { %v1037_v22 = vmax.f32 %v1007_v20, 0.0 }
 0x2b9   : > { %v1008_v21 = vpop.f32.mrf.mxu3 }
 0x2ba   : > { %v1009_v23 = vadd.f32 %v2206_v61, %v1008_v21 }
 0x2bc   : > { %v1038_v24 = vmax.f32 %v1009_v23, 0.0 }
 0x2be   : > { %v1050_v26 = vpack.c.bf16 %v1038_v24, %v1037_v22 }
 0x2c0   : > { %1582 = vmatmul.msk.bf16.gmra.mxu3 %vm863_vm0, %v1050_v26 }
 0x2c1   : > { %v1011_v27 = vpop.f32.mrf.mxu3 }
 0x2c2   : > { %v1012_v29 = vadd.f32 %v2206_v61, %v1011_v27 }
 0x2c4   : > { %v1039_v32 = vmax.f32 %v1012_v29, 0.0 }
 0x2c9   : > { %v1013_v30 = vpop.f32.mrf.mxu3 }
 0x2ca   : > { %v1014_v31 = vadd.f32 %v2206_v61, %v1013_v30 }
 0x2cc   : > { %v1040_v33 = vmax.f32 %v1014_v31, 0.0 }
 0x2ce   : > { %v1051_v34 = vpack.c.bf16 %v1040_v33, %v1039_v32 }
 0x2d0   : > { %1583 = vmatmul.msk.bf16.gmra.mxu3 %vm863_vm0, %v1051_v34 }
 0x2d1   : > { %v1016_v36 = vpop.f32.mrf.mxu3 }
 0x2d2   : > { %v1017_v37 = vadd.f32 %v2206_v61, %v1016_v36 }
 0x2d4   : > { %v1041_v40 = vmax.f32 %v1017_v37, 0.0 }
 0x2d9   : > { %v1018_v38 = vpop.f32.mrf.mxu3 }
 0x2da   : > { %v1019_v39 = vadd.f32 %v2206_v61, %v1018_v38 }
 0x2dc   : > { %v1042_v41 = vmax.f32 %v1019_v39, 0.0 }
 0x2de   : > { %v1052_v42 = vpack.c.bf16 %v1042_v41, %v1041_v40 }
 0x2e0   : > { %1584 = vmatmul.msk.bf16.gmra.mxu3 %vm863_vm0, %v1052_v42 }
 0x2e1   : > { %v1021_v45 = vpop.f32.mrf.mxu3 }
 0x2e2   : > { %v1022_v46 = vadd.f32 %v2206_v61, %v1021_v45 }
 0x2e4   : > { %v1043_v50 = vmax.f32 %v1022_v46, 0.0 }
 0x2e9   : > { %v1023_v47 = vpop.f32.mrf.mxu3 }
 0x2ea   : > { %v1024_v48 = vadd.f32 %v2206_v61, %v1023_v47 }
 0x2ec   : > { %v1044_v51 = vmax.f32 %v1024_v48, 0.0 }
 0x2ee   : > { %v1053_v52 = vpack.c.bf16 %v1044_v51, %v1043_v50 }
 0x2f0   : > { %1585 = vmatmul.msk.bf16.gmra.mxu3 %vm863_vm0, %v1053_v52 }
 0x2f1   : > { %v1026_v53 = vpop.f32.mrf.mxu3 }
 0x2f2   : > { %v1027_v55 = vadd.f32 %v2206_v61, %v1026_v53 }
 0x2f4   : > { %v1045_v58 = vmax.f32 %v1027_v55, 0.0 }
 0x2f9   : > { %v1028_v56 = vpop.f32.mrf.mxu3 }
 0x2fa   : > { %v1029_v57 = vadd.f32 %v2206_v61, %v1028_v56 }
 0x2fc   : > { %v1046_v59 = vmax.f32 %v1029_v57, 0.0 }
 0x2fe   : > { %v1054_v60 = vpack.c.bf16 %v1046_v59, %v1045_v58 }
 0x300   : > { %1586 = vmatmul.msk.bf16.gmra.mxu3 %vm863_vm0, %v1054_v60 }
 0x307   : > { %v1124_v62 = vpop.f32.mrf.mxu3 }
 0x308   : > { %v1125_v0 = vadd.f32 %v1737_v63, %v1124_v62 }
 0x30a   : > { %v1164_v3 = vmax.f32 %v1125_v0, 0.0 }
 0x30f   : > { %v1126_v1 = vpop.f32.mrf.mxu3 }
 0x310   : > { %v1127_v2 = vadd.f32 %v1737_v63, %v1126_v1 }
 0x312   : > { %v1165_v4 = vmax.f32 %v1127_v2, 0.0 }
 0x314   : > { %v1180_v5 = vpack.c.bf16 %v1165_v4, %v1164_v3 }
 0x316   : > { %1264 = vmatmul.bf16.vlgmr.msrb.gmra.mxu2 %v1180_v5 }
 0x317   : > { %v1129_v6 = vpop.f32.mrf.mxu3 }
 0x318   : > { %v1130_v7 = vadd.f32 %v1737_v63, %v1129_v6 }
 0x31a   : > { %v1166_v9 = vmax.f32 %v1130_v7, 0.0 }
 0x31f   : > { %v1131_v61 = vpop.f32.mrf.mxu3 }
 0x320   : > { %v1132_v8 = vadd.f32 %v1737_v63, %v1131_v61 }
 0x322   : > { %v1167_v10 = vmax.f32 %v1132_v8, 0.0 }
 0x324   : > { %v1181_v11 = vpack.c.bf16 %v1167_v10, %v1166_v9 }
 0x326   : > { %1269 = vmatmul.bf16.gmra.mxu2 %v1181_v11 }
 0x32d   : > { %v1134_v12 = vpop.f32.mrf.mxu3 }
 0x32e   : > { %v1135_v13 = vadd.f32 %v1737_v63, %v1134_v12 }
 0x330   : > { %v1168_v16 = vmax.f32 %v1135_v13, 0.0 }
 0x335   : > { %v1136_v14 = vpop.f32.mrf.mxu3 }
 0x336   : > { %v1137_v15 = vadd.f32 %v1737_v63, %v1136_v14 }
 0x338   : > { %v1169_v17 = vmax.f32 %v1137_v15, 0.0 }
 0x33a   : > { %v1182_v18 = vpack.c.bf16 %v1169_v17, %v1168_v16 }
 0x33c   : > { %1274 = vmatmul.bf16.gmra.mxu2 %v1182_v18 }
 0x343   : > { %v1139_v19 = vpop.f32.mrf.mxu3 }
 0x344   : > { %v1140_v20 = vadd.f32 %v1737_v63, %v1139_v19 }
 0x346   : > { %v1170_v22 = vmax.f32 %v1140_v20, 0.0 }
 0x34b   : > { %v1141_v21 = vpop.f32.mrf.mxu3 }
 0x34c   : > { %v1142_v23 = vadd.f32 %v1737_v63, %v1141_v21 }
 0x34e   : > { %v1171_v24 = vmax.f32 %v1142_v23, 0.0 }
 0x350   : > { %v1183_v26 = vpack.c.bf16 %v1171_v24, %v1170_v22 }
 0x352   : > { %1279 = vmatmul.bf16.gmra.mxu2 %v1183_v26 }
 0x353   : > { %v1144_v25 = vpop.f32.mrf.mxu3 }
 0x354   : > { %v1145_v27 = vadd.f32 %v1737_v63, %v1144_v25 }
 0x356   : > { %v1172_v30 = vmax.f32 %v1145_v27, 0.0 }
 0x35b   : > { %v1146_v28 = vpop.f32.mrf.mxu3 }
 0x35c   : > { %v1147_v29 = vadd.f32 %v1737_v63, %v1146_v28 }
 0x35e   : > { %v1173_v31 = vmax.f32 %v1147_v29, 0.0 }
 0x360   : > { %v1184_v32 = vpack.c.bf16 %v1173_v31, %v1172_v30 }
 0x362   : > { %1284 = vmatmul.bf16.gmra.mxu2 %v1184_v32 }
 0x363   : > { %v1149_v33 = vpop.f32.mrf.mxu3 }
 0x364   : > { %v1150_v34 = vadd.f32 %v1737_v63, %v1149_v33 }
 0x366   : > { %v1174_v37 = vmax.f32 %v1150_v34, 0.0 }
 0x36b   : > { %v1151_v35 = vpop.f32.mrf.mxu3 }
 0x36c   : > { %v1152_v36 = vadd.f32 %v1737_v63, %v1151_v35 }
 0x36e   : > { %v1175_v38 = vmax.f32 %v1152_v36, 0.0 }
 0x370   : > { %v1185_v39 = vpack.c.bf16 %v1175_v38, %v1174_v37 }
 0x372   : > { %1289 = vmatmul.bf16.gmra.mxu2 %v1185_v39 }
 0x373   : > { %v1154_v40 = vpop.f32.mrf.mxu3 }
 0x374   : > { %v1155_v41 = vadd.f32 %v1737_v63, %v1154_v40 }
 0x376   : > { %v1176_v44 = vmax.f32 %v1155_v41, 0.0 }
 0x37b   : > { %v1156_v42 = vpop.f32.mrf.mxu3 }
 0x37c   : > { %v1157_v43 = vadd.f32 %v1737_v63, %v1156_v42 }
 0x37e   : > { %v1177_v45 = vmax.f32 %v1157_v43, 0.0 }
 0x380   : > { %v1186_v46 = vpack.c.bf16 %v1177_v45, %v1176_v44 }
 0x382   : > { %1294 = vmatmul.bf16.gmra.mxu2 %v1186_v46 }
 0x383   : > { %v1159_v47 = vpop.f32.mrf.mxu3 }
 0x384   : > { %v1160_v48 = vadd.f32 %v1737_v63, %v1159_v47 }
 0x386   : > { %v1178_v51 = vmax.f32 %v1160_v48, 0.0 }
 0x38b   : > { %v1161_v49 = vpop.f32.mrf.mxu3 }
 0x38c   : > { %v1162_v50 = vadd.f32 %v1737_v63, %v1161_v49 }
 0x38e   : > { %v1179_v52 = vmax.f32 %v1162_v50, 0.0 }
 0x390   : > { %v1187_v53 = vpack.c.bf16 %v1179_v52, %v1178_v51 }
 0x392   : > { %1299 = vmatmul.bf16.gmra.mxu2 %v1187_v53 }
 0x399   : > { %v1265_v55 = vpop.f32.mrf.mxu2 }
 0x39a   : > { %v1266_v56 = vadd.f32 %v1738_v54, %v1265_v55 }
 0x39c   : > { %1305 = vst [vmem:[%s2239_s13] sm:$0xff] %v1266_v56 }
 0x3a1   : > { %v1267_v57 = vpop.f32.mrf.mxu2 }
 0x3a2   : > { %v1268_v58 = vadd.f32 %v1738_v54, %v1267_v57 }
 0x3a4   : > { %1306 = vst [vmem:[%s2239_s13 + $0x8] sm:$0xff] %v1268_v58 }
 0x3a9   : > { %v1270_v59 = vpop.f32.mrf.mxu2 }
 0x3aa   : > { %v1271_v60 = vadd.f32 %v1738_v54, %v1270_v59 }
 0x3ac   : > { %1307 = vst [vmem:[%s2239_s13 + $0x10] sm:$0xff] %v1271_v60 }
 0x3b1   : > { %v1272_v62 = vpop.f32.mrf.mxu2 }
 0x3b2   : > { %v1273_v63 = vadd.f32 %v1738_v54, %v1272_v62 }
 0x3b4   : > { %1308 = vst [vmem:[%s2239_s13 + $0x18] sm:$0xff] %v1273_v63 }
 0x3bf   : > { %v1275_v0 = vpop.f32.mrf.mxu2 }
 0x3c0   : > { %v1276_v1 = vadd.f32 %v1738_v54, %v1275_v0 }
 0x3c2   : > { %1309 = vst [vmem:[%s2239_s13 + $0x20] sm:$0xff] %v1276_v1 }
 0x3c7   : > { %v1277_v2 = vpop.f32.mrf.mxu2 }
 0x3c8   : > { %v1278_v3 = vadd.f32 %v1738_v54, %v1277_v2 }
 0x3ca   : > { %1310 = vst [vmem:[%s2239_s13 + $0x28] sm:$0xff] %v1278_v3 }
 0x3d5   : > { %v1280_v4 = vpop.f32.mrf.mxu2 }
 0x3d6   : > { %v1281_v5 = vadd.f32 %v1738_v54, %v1280_v4 }
 0x3d8   : > { %1311 = vst [vmem:[%s2239_s13 + $0x30] sm:$0xff] %v1281_v5 }
 0x3dd   : > { %v1282_v6 = vpop.f32.mrf.mxu2 }
 0x3de   : > { %v1283_v7 = vadd.f32 %v1738_v54, %v1282_v6 }
 0x3e0   : > { %1312 = vst [vmem:[%s2239_s13 + $0x38] sm:$0xff] %v1283_v7 }
 0x3e5   : > { %v1285_v61 = vpop.f32.mrf.mxu2 }
 0x3e6   : > { %v1286_v8 = vadd.f32 %v1738_v54, %v1285_v61 }
 0x3e8   : > { %1313 = vst [vmem:[%s2239_s13 + $0x40] sm:$0xff] %v1286_v8 }
 0x3ed   : > { %v1287_v9 = vpop.f32.mrf.mxu2 }
 0x3ee   : > { %v1288_v10 = vadd.f32 %v1738_v54, %v1287_v9 }
 0x3f0   : > { %1314 = vst [vmem:[%s2239_s13 + $0x48] sm:$0xff] %v1288_v10 }
 0x3f5   : > { %v1290_v11 = vpop.f32.mrf.mxu2 }
 0x3f6   : > { %v1291_v12 = vadd.f32 %v1738_v54, %v1290_v11 }
 0x3f8   : > { %1315 = vst [vmem:[%s2239_s13 + $0x50] sm:$0xff] %v1291_v12 }
 0x3fd   : > { %v1292_v13 = vpop.f32.mrf.mxu2 }
 0x3fe   : > { %v1293_v14 = vadd.f32 %v1738_v54, %v1292_v13 }
 0x400   : > { %1316 = vst [vmem:[%s2239_s13 + $0x58] sm:$0xff] %v1293_v14 }
 0x405   : > { %v1295_v15 = vpop.f32.mrf.mxu2 }
 0x406   : > { %v1296_v16 = vadd.f32 %v1738_v54, %v1295_v15 }
 0x408   : > { %1317 = vst [vmem:[%s2239_s13 + $0x60] sm:$0xff] %v1296_v16 }
 0x40d   : > { %v1297_v17 = vpop.f32.mrf.mxu2 }
 0x40e   : > { %v1298_v18 = vadd.f32 %v1738_v54, %v1297_v17 }
 0x410   : > { %1318 = vst [vmem:[%s2239_s13 + $0x68] sm:$0xff] %v1298_v18 }
 0x415   : > { %v1300_v19 = vpop.f32.mrf.mxu2 }
 0x416   : > { %v1301_v20 = vadd.f32 %v1738_v54, %v1300_v19 }
 0x418   : > { %1319 = vst [vmem:[%s2239_s13 + $0x70] sm:$0xff] %v1301_v20 }
 0x41d   : > { %v1302_v21 = vpop.f32.mrf.mxu2 }
 0x41e   : > { %v1303_v23 = vadd.f32 %v1738_v54, %v1302_v21 }
 0x420   : > { %1320 = vst [vmem:[%s2239_s13 + $0x78] sm:$0xff] %v1303_v23 }
 0x421   : > { %1826 = shalt.err (!%p1823_p10)
}
 0x422   : > { %s1874_s12 = smov 128   ;;  %s1875_s13 = smov 8  }
 0x423   : > { %1678 = dma.vmem_to_hbm [thread:$0]  (%p2015_p3), %s1335_s24, 2048, %s1337_s21, %s1322_s14, %s1874_s12, %s1874_s12, %s1875_s13  }
 0x424 PF: > { %s2328_s17 = sld [smem:[#allocation11_spill]]  ;;  %p2330_p12 = scmp.ge.s32.totalorder %s1869_s28, 2 }
 0x426   : > { %p1689_p13 = pnand %p2330_p12, %p1981_p6 }
 0x428   : > { %p1690_p0 = pneg %p1689_p13 }
 0x42a   : > { %s1351_s23 = sand.u32 1, %s2328_s17  }
 0x42b   : > { %s1352_s29 = scalar_lea.sflag [#allocation4], %s1351_s23 }
 0x42c   : > { %1852 = dma.done.wait (%p1690_p0), %s1352_s29, 2048  }
 0x42d   : > { %1854 = vsyncadd (%p1690_p0), %s1352_s29, 4294965248  ;;  %s2331_s16 = sld [smem:[#allocation12_spill]]  ;;  %p27_p5 = scmp.ge.s32.totalorder %s1999_s22, 4  }
 0x42e   : > { %s2332_s27 = sld [smem:[#allocation14_spill]]  ;;  %s2333_s25 = smov %s1861_s26 }
 0x42f   : > { %s2335_s28 = smov %s1999_s22  ;;  %29 = sbr.rel (!%p27_p5) target bundleno = 10 (0xa), region = 121 }
 0x433   : > { %s2334_s26 = smov %s2331_s16 }
 0x434   :  { %1358 = vsyncpa [#allocation3], 1 }
 0x435   :  { %1360 = vsyncpa [#allocation3 + $0x1], 1 }
 0x436   :  { %1361 = vsyncpa [#allocation6], 1 }
 0x437   :  { %1362 = vsyncpa [#allocation4], 1 }
 0x438   :  { %1364 = vsyncpa [#allocation4 + $0x1], 1 }

</bundles_post_ra>
